<compile_context>
chip_gen: v6e
topology: v6e:2x2x1
jax: 0.10.0
libtpu: 0.0.40
codegen_flags: <defaults>
</compile_context>

<pallas_src>
import jax
import jax.numpy as jnp
from jax.experimental import pallas as pl
from jax.experimental.pallas import tpu as pltpu


# ----------------------------------------------------------------------------
# 1) One direction of one LSTM layer: sequential grid over time, state in VMEM.
# ----------------------------------------------------------------------------
def _lstm_step_kernel(x_ref, wih_ref, whh_ref, b_ref, h_out_ref, h_state, c_state):
    t = pl.program_id(0)

    @pl.when(t == 0)
    def _():
        h_state[...] = jnp.zeros_like(h_state)
        c_state[...] = jnp.zeros_like(c_state)

    x_t = x_ref[0]                      # (B, D_in)
    h_prev = h_state[...]               # (B, H)
    c_prev = c_state[...]               # (B, H)

    gates = (jnp.dot(x_t, wih_ref[...], preferred_element_type=jnp.float32)
             + jnp.dot(h_prev, whh_ref[...], preferred_element_type=jnp.float32)
             + b_ref[...])              # (B, 4H), PyTorch gate order [i, f, g, o]

    H = h_prev.shape[-1]
    i_g = jax.nn.sigmoid(gates[:, 0 * H:1 * H])
    f_g = jax.nn.sigmoid(gates[:, 1 * H:2 * H])
    g_g = jnp.tanh(gates[:, 2 * H:3 * H])
    o_g = jax.nn.sigmoid(gates[:, 3 * H:4 * H])

    c_new = f_g * c_prev + i_g * g_g
    h_new = o_g * jnp.tanh(c_new)

    c_state[...] = c_new
    h_state[...] = h_new
    h_out_ref[0] = h_new


def lstm_layer_dir(x, w_ih, w_hh, b, *, reverse=False):
    """x: (T, B, D_in); w_ih: (4H, D_in); w_hh: (4H, H); b: (4H,). Returns (T, B, H)."""
    T, B, D_in = x.shape
    H4 = w_ih.shape[0]
    H = H4 // 4
    xs = x[::-1] if reverse else x

    h_seq = pl.pallas_call(
        _lstm_step_kernel,
        out_shape=jax.ShapeDtypeStruct((T, B, H), jnp.float32),
        grid_spec=pltpu.PrefetchScalarGridSpec(
            num_scalar_prefetch=0,
            grid=(T,),
            in_specs=[
                pl.BlockSpec((1, B, D_in), lambda t: (t, 0, 0)),
                pl.BlockSpec((D_in, H4), lambda t: (0, 0)),
                pl.BlockSpec((H, H4), lambda t: (0, 0)),
                pl.BlockSpec((1, H4), lambda t: (0, 0)),
            ],
            out_specs=pl.BlockSpec((1, B, H), lambda t: (t, 0, 0)),
            scratch_shapes=[
                pltpu.VMEM((B, H), jnp.float32),   # h state (carried across grid)
                pltpu.VMEM((B, H), jnp.float32),   # c state
            ],
        ),
        compiler_params=pltpu.CompilerParams(
            dimension_semantics=("arbitrary",),    # true recurrence: sequential
        ),
    )(xs.astype(jnp.float32),
      jnp.asarray(w_ih.T, jnp.float32),
      jnp.asarray(w_hh.T, jnp.float32),
      b.reshape(1, H4).astype(jnp.float32))

    return h_seq[::-1] if reverse else h_seq


# ----------------------------------------------------------------------------
# 2) MatchingAttention 'general2', all query timesteps at once, grid over batch.
# ----------------------------------------------------------------------------
def _matchatt_kernel(emo_ref, mask_ref, wt_ref, bt_ref, att_ref, alpha_ref):
    emo = emo_ref[0]                    # (T, D)  memory M for this batch element
    mask = mask_ref[0]                  # (1, T)  utterance mask over keys

    # transform(x) applied to every query timestep
    q = jnp.dot(emo, wt_ref[...], preferred_element_type=jnp.float32) + bt_ref[...]  # (T, D)

    # scores[tq, tk] = <q_tq, M_tk>; mask applied to memory AND to the bmm result
    scores = jax.lax.dot_general(q, emo, (((1,), (1,)), ((), ())),
                                 preferred_element_type=jnp.float32)  # (Tq, Tk)
    scores = jnp.tanh(scores * (mask * mask))

    # softmax over keys (includes masked positions, exactly as in PyTorch), then
    # re-mask and renormalize
    m_max = jnp.max(scores, axis=-1, keepdims=True)
    p = jnp.exp(scores - m_max)
    p = p / jnp.sum(p, axis=-1, keepdims=True)
    pm = p * mask
    alpha = pm / jnp.sum(pm, axis=-1, keepdims=True)

    att_ref[0] = jnp.dot(alpha, emo, preferred_element_type=jnp.float32)  # (Tq, D)
    alpha_ref[0] = alpha                                                  # (Tq, Tk)


def matching_attention_general2(emotions, umask, w_t, b_t):
    """emotions: (T, B, D); umask: (B, T); w_t: (D, D); b_t: (D,)."""
    T, B, D = emotions.shape
    emo_b = jnp.transpose(emotions, (1, 0, 2)).astype(jnp.float32)   # (B, T, D)
    mask3 = umask.astype(jnp.float32).reshape(B, 1, T)

    att_b, alpha = pl.pallas_call(
        _matchatt_kernel,
        out_shape=(
            jax.ShapeDtypeStruct((B, T, D), jnp.float32),
            jax.ShapeDtypeStruct((B, T, T), jnp.float32),
        ),
        grid_spec=pltpu.PrefetchScalarGridSpec(
            num_scalar_prefetch=0,
            grid=(B,),
            in_specs=[
                pl.BlockSpec((1, T, D), lambda b: (b, 0, 0)),
                pl.BlockSpec((1, 1, T), lambda b: (b, 0, 0)),
                pl.BlockSpec((D, D), lambda b: (0, 0)),
                pl.BlockSpec((1, D), lambda b: (0, 0)),
            ],
            out_specs=(
                pl.BlockSpec((1, T, D), lambda b: (b, 0, 0)),
                pl.BlockSpec((1, T, T), lambda b: (b, 0, 0)),
            ),
        ),
        compiler_params=pltpu.CompilerParams(
            dimension_semantics=("parallel",),     # independent per batch element
        ),
    )(emo_b, mask3, jnp.asarray(w_t.T, jnp.float32),
      b_t.reshape(1, D).astype(jnp.float32))

    return jnp.transpose(att_b, (1, 0, 2)), alpha   # (T, B, D), (B, Tq, Tk)


# ----------------------------------------------------------------------------
# 3+4) Fused head: relu(linear) -> [dropout = identity in eval] -> log_softmax(fc)
# ----------------------------------------------------------------------------
def _head_kernel(x_ref, wl_ref, bl_ref, ws_ref, bs_ref, out_ref):
    x = x_ref[...]                                                    # (tile, D)
    h = jnp.dot(x, wl_ref[...], preferred_element_type=jnp.float32) + bl_ref[...]
    h = jnp.maximum(h, 0.0)
    # TODO(synk): nn.Dropout is identity in eval mode; training-mode dropout RNG not implemented.
    logits = jnp.dot(h, ws_ref[...], preferred_element_type=jnp.float32) + bs_ref[...]
    m = jnp.max(logits, axis=-1, keepdims=True)
    z = logits - m
    out_ref[...] = z - jnp.log(jnp.sum(jnp.exp(z), axis=-1, keepdims=True))


def classifier_head(x, w_l, b_l, w_s, b_s, *, tile_rows=256):
    """x: (N, D) rows; returns log-probs (N, C)."""
    N, D = x.shape
    Dh, C = w_l.shape[0], w_s.shape[0]
    tile = min(tile_rows, ((N + 7) // 8) * 8)        # large lane/sublane-friendly tiles
    N_pad = ((N + tile - 1) // tile) * tile
    x_p = x.astype(jnp.float32)
    if N_pad != N:
        x_p = jnp.pad(x_p, ((0, N_pad - N), (0, 0)))

    out = pl.pallas_call(
        _head_kernel,
        out_shape=jax.ShapeDtypeStruct((N_pad, C), jnp.float32),
        grid_spec=pltpu.PrefetchScalarGridSpec(
            num_scalar_prefetch=0,
            grid=(N_pad // tile,),
            in_specs=[
                pl.BlockSpec((tile, D), lambda i: (i, 0)),
                pl.BlockSpec((D, Dh), lambda i: (0, 0)),
                pl.BlockSpec((1, Dh), lambda i: (0, 0)),
                pl.BlockSpec((Dh, C), lambda i: (0, 0)),
                pl.BlockSpec((1, C), lambda i: (0, 0)),
            ],
            out_specs=pl.BlockSpec((tile, C), lambda i: (i, 0)),
        ),
        compiler_params=pltpu.CompilerParams(
            dimension_semantics=("parallel",),
        ),
    )(x_p,
      jnp.asarray(w_l.T, jnp.float32), b_l.reshape(1, Dh).astype(jnp.float32),
      jnp.asarray(w_s.T, jnp.float32), b_s.reshape(1, C).astype(jnp.float32))

    return out[:N]


# ----------------------------------------------------------------------------
# Full LSTMModel forward (att2=True path)
# ----------------------------------------------------------------------------
def lstm_model_forward_pallas(U, umask, params, n_classes):
    T, B, _ = U.shape
    # 2-layer bidirectional LSTM (inter-layer dropout = identity in eval mode)
    h0f = lstm_layer_dir(U, params["w_ih_l0"], params["w_hh_l0"], params["b_l0"])
    h0b = lstm_layer_dir(U, params["w_ih_l0_rev"], params["w_hh_l0_rev"], params["b_l0_rev"], reverse=True)
    h0 = jnp.concatenate([h0f, h0b], axis=-1)
    h1f = lstm_layer_dir(h0, params["w_ih_l1"], params["w_hh_l1"], params["b_l1"])
    h1b = lstm_layer_dir(h0, params["w_ih_l1_rev"], params["w_hh_l1_rev"], params["b_l1_rev"], reverse=True)
    emotions = jnp.concatenate([h1f, h1b], axis=-1)                 # (T, B, 2*D_e)

    att_emotions, alpha_bqk = matching_attention_general2(
        emotions, umask, params["att_w"], params["att_b"])          # (T,B,D), (B,Tq,Tk)

    D = emotions.shape[-1]
    log_prob = classifier_head(att_emotions.reshape(T * B, D),
                               params["lin_w"], params["lin_b"],
                               params["fc_w"], params["fc_b"]).reshape(T, B, n_classes)
    alpha = jnp.transpose(alpha_bqk, (1, 0, 2))   # (Tq, B, Tk): torch's stacked alpha list
    return log_prob, alpha, emotions


# ----------------------------------------------------------------------------
# Pure-JAX reference (mirrors the PyTorch forward) for correctness checking
# ----------------------------------------------------------------------------
def lstm_model_forward_ref(U, umask, params, n_classes):
    def ref_dir(x, wi, wh, b, reverse=False):
        xs = x[::-1] if reverse else x
        Bb, H = x.shape[1], wh.shape[1]

        def step(carry, xt):
            h, c = carry
            gates = xt @ wi.T + h @ wh.T + b
            i, f, g, o = jnp.split(gates, 4, axis=-1)
            c = jax.nn.sigmoid(f) * c + jax.nn.sigmoid(i) * jnp.tanh(g)
            h = jax.nn.sigmoid(o) * jnp.tanh(c)
            return (h, c), h

        init = (jnp.zeros((Bb, H), jnp.float32), jnp.zeros((Bb, H), jnp.float32))
        _, hs = jax.lax.scan(step, init, xs)
        return hs[::-1] if reverse else hs

    h0 = jnp.concatenate(
        [ref_dir(U, params["w_ih_l0"], params["w_hh_l0"], params["b_l0"]),
         ref_dir(U, params["w_ih_l0_rev"], params["w_hh_l0_rev"], params["b_l0_rev"], True)], -1)
    emotions = jnp.concatenate(
        [ref_dir(h0, params["w_ih_l1"], params["w_hh_l1"], params["b_l1"]),
         ref_dir(h0, params["w_ih_l1_rev"], params["w_hh_l1_rev"], params["b_l1_rev"], True)], -1)

    q = jnp.einsum("tbd,ed->tbe", emotions, params["att_w"]) + params["att_b"]
    scores = jnp.einsum("qbd,kbd->bqk", q, emotions)
    m = umask.astype(jnp.float32)[:, None, :]
    scores = jnp.tanh(scores * m * m)
    p = jax.nn.softmax(scores, axis=-1)
    pm = p * m
    alpha = pm / jnp.sum(pm, axis=-1, keepdims=True)
    att = jnp.einsum("bqk,kbd->qbd", alpha, emotions)

    hidden = jax.nn.relu(jnp.einsum("qbd,hd->qbh", att, params["lin_w"]) + params["lin_b"])
    logits = jnp.einsum("qbh,ch->qbc", hidden, params["fc_w"]) + params["fc_b"]
    log_prob = jax.nn.log_softmax(logits, axis=-1)
    return log_prob, jnp.transpose(alpha, (1, 0, 2)), emotions


def init_params(key, D_m, D_e, D_h, n_classes):
    ks = iter(jax.random.split(key, 24))

    def rn(shape, scale):
        return jax.random.normal(next(ks), shape, jnp.float32) * scale

    p = {}
    for layer, d_in in ((0, D_m), (1, 2 * D_e)):
        for suffix in ("", "_rev"):
            p[f"w_ih_l{layer}{suffix}"] = rn((4 * D_e, d_in), 0.2)
            p[f"w_hh_l{layer}{suffix}"] = rn((4 * D_e, D_e), 0.2)
            p[f"b_l{layer}{suffix}"] = rn((4 * D_e,), 0.1)   # b_ih + b_hh combined
    D = 2 * D_e
    p["att_w"] = rn((D, D), 0.2)
    p["att_b"] = rn((D,), 0.1)
    p["lin_w"] = rn((D_h, D), 0.2)
    p["lin_b"] = rn((D_h,), 0.1)
    p["fc_w"] = rn((n_classes, D_h), 0.2)
    p["fc_b"] = rn((n_classes,), 0.1)
    return p


if __name__ == "__main__":
    T, B = 8, 2
    D_m, D_e, D_h, n_classes = 64, 32, 32, 7

    key = jax.random.PRNGKey(0)
    kp, ku = jax.random.split(key, 2)
    params = init_params(kp, D_m, D_e, D_h, n_classes)

    U = jax.random.normal(ku, (T, B, D_m), dtype=jnp.float32)        # seq_len, batch, D_m
    qmask = jnp.zeros((T, B, 2), jnp.float32)                        # party mask: unused by forward
    umask = jnp.ones((B, T), jnp.float32).at[1, 6:].set(0.0)         # last 2 utterances of dialog 1 padded

    log_prob, alpha, emotions = lstm_model_forward_pallas(U, umask, params, n_classes)
    log_prob = jax.block_until_ready(log_prob)

    ref_lp, ref_alpha, ref_emo = lstm_model_forward_ref(U, umask, params, n_classes)

    assert log_prob.shape == (T, B, n_classes)
    assert jnp.allclose(emotions, ref_emo, rtol=5e-3, atol=5e-3)
    assert jnp.allclose(alpha, ref_alpha, rtol=5e-3, atol=5e-3)
    assert jnp.allclose(log_prob, ref_lp, rtol=5e-3, atol=5e-3)

    print("KERNEL_OK")
</pallas_src>

<mosaic_0001>
module attributes {stable_mosaic.version = 11 : i64} {
  func.func @_lstm_step_kernel(%arg0: i32, %arg1: memref<1x2x64xf32, #tpu.memory_space<vmem>>, %arg2: memref<64x128xf32, #tpu.memory_space<vmem>>, %arg3: memref<32x128xf32, #tpu.memory_space<vmem>>, %arg4: memref<1x128xf32, #tpu.memory_space<vmem>>, %arg5: memref<1x2x32xf32, #tpu.memory_space<vmem>>, %arg6: memref<2x32xf32, #tpu.memory_space<vmem>>, %arg7: memref<2x32xf32, #tpu.memory_space<vmem>>) attributes {dimension_semantics = [#tpu.dimension_semantics<arbitrary>], iteration_bounds = array<i64: 8>, scalar_prefetch = 0 : i64, scratch_operands = 2 : i64, tpu.core_type = #tpu.core_type<tc>, window_params = [{transform_indices = @transform_0, window_bounds = array<i64: 1, 2, 64>}, {pipeline_mode = #tpu.pipeline_mode<synchronous>, transform_indices = @transform_1, window_bounds = array<i64: 64, 128>}, {pipeline_mode = #tpu.pipeline_mode<synchronous>, transform_indices = @transform_2, window_bounds = array<i64: 32, 128>}, {pipeline_mode = #tpu.pipeline_mode<synchronous>, transform_indices = @transform_3, window_bounds = array<i64: 1, 128>}, {transform_indices = @transform_4, window_bounds = array<i64: 1, 2, 32>}]} {
    %c0_i32 = arith.constant 0 : i32
    %0 = arith.cmpi eq, %arg0, %c0_i32 : i32
    %1 = arith.extui %0 : i1 to i32
    %c0_i32_0 = arith.constant 0 : i32
    %2 = arith.cmpi ne, %1, %c0_i32_0 : i32
    scf.if %2 {
      %cst_24 = arith.constant 0.000000e+00 : f32
      %45 = vector.broadcast %cst_24 : f32 to vector<2x32xf32>
      %c0_25 = arith.constant 0 : index
      %c0_26 = arith.constant 0 : index
      %46 = vector.load %arg6[%c0_25, %c0_26] : memref<2x32xf32, #tpu.memory_space<vmem>>, vector<2x32xf32>
      tpu.vector_store %arg6[%c0_25, %c0_26], %45 {strides = array<i32>} : memref<2x32xf32, #tpu.memory_space<vmem>>, vector<2x32xf32>,
      %cst_27 = arith.constant 0.000000e+00 : f32
      %47 = vector.broadcast %cst_27 : f32 to vector<2x32xf32>
      %c0_28 = arith.constant 0 : index
      %c0_29 = arith.constant 0 : index
      %48 = vector.load %arg7[%c0_28, %c0_29] : memref<2x32xf32, #tpu.memory_space<vmem>>, vector<2x32xf32>
      tpu.vector_store %arg7[%c0_28, %c0_29], %47 {strides = array<i32>} : memref<2x32xf32, #tpu.memory_space<vmem>>, vector<2x32xf32>,
    } else {
    }
    %c0 = arith.constant 0 : index
    %c0_1 = arith.constant 0 : index
    %c0_2 = arith.constant 0 : index
    %3 = vector.load %arg1[%c0, %c0_1, %c0_2] : memref<1x2x64xf32, #tpu.memory_space<vmem>>, vector<1x2x64xf32>
    %4 = vector.shape_cast %3 : vector<1x2x64xf32> to vector<2x64xf32>
    %c0_3 = arith.constant 0 : index
    %c0_4 = arith.constant 0 : index
    %5 = vector.load %arg6[%c0_3, %c0_4] : memref<2x32xf32, #tpu.memory_space<vmem>>, vector<2x32xf32>
    %c0_5 = arith.constant 0 : index
    %c0_6 = arith.constant 0 : index
    %6 = vector.load %arg7[%c0_5, %c0_6] : memref<2x32xf32, #tpu.memory_space<vmem>>, vector<2x32xf32>
    %c0_7 = arith.constant 0 : index
    %c0_8 = arith.constant 0 : index
    %7 = vector.load %arg2[%c0_7, %c0_8] : memref<64x128xf32, #tpu.memory_space<vmem>>, vector<64x128xf32>
    %cst = arith.constant dense<0.000000e+00> : vector<2x128xf32>
    %8 = tpu.matmul %4, %7, %cst {dimension_numbers = #tpu.dot_dimension_numbers<[1], [0], [0], [1], [0, 0, 1, 1], [], []>} : vector<2x64xf32>, vector<64x128xf32>, vector<2x128xf32> -> vector<2x128xf32>
    %c0_9 = arith.constant 0 : index
    %c0_10 = arith.constant 0 : index
    %9 = vector.load %arg3[%c0_9, %c0_10] : memref<32x128xf32, #tpu.memory_space<vmem>>, vector<32x128xf32>
    %cst_11 = arith.constant dense<0.000000e+00> : vector<2x128xf32>
    %10 = tpu.matmul %5, %9, %cst_11 {dimension_numbers = #tpu.dot_dimension_numbers<[1], [0], [0], [1], [0, 0, 1, 1], [], []>} : vector<2x32xf32>, vector<32x128xf32>, vector<2x128xf32> -> vector<2x128xf32>
    %11 = arith.addf %8, %10 : vector<2x128xf32>
    %c0_12 = arith.constant 0 : index
    %c0_13 = arith.constant 0 : index
    %12 = vector.load %arg4[%c0_12, %c0_13] : memref<1x128xf32, #tpu.memory_space<vmem>>, vector<1x128xf32>
    %13 = vector.broadcast %12 : vector<1x128xf32> to vector<2x128xf32>
    %14 = arith.addf %11, %13 : vector<2x128xf32>
    %15 = vector.extract_strided_slice %14 {offsets = [0, 0], sizes = [2, 32], strides = [1, 1]} : vector<2x128xf32> to vector<2x32xf32>
    %16 = arith.negf %15 : vector<2x32xf32>
    %17 = math.exp %16 : vector<2x32xf32>
    %cst_14 = arith.constant 1.000000e+00 : f32
    %18 = vector.broadcast %cst_14 : f32 to vector<2x32xf32>
    %19 = arith.addf %18, %17 : vector<2x32xf32>
    %20 = arith.divf %18, %19 : vector<2x32xf32>
    %21 = vector.extract_strided_slice %14 {offsets = [0, 32], sizes = [2, 32], strides = [1, 1]} : vector<2x128xf32> to vector<2x32xf32>
    %22 = arith.negf %21 : vector<2x32xf32>
    %23 = math.exp %22 : vector<2x32xf32>
    %cst_15 = arith.constant 1.000000e+00 : f32
    %24 = vector.broadcast %cst_15 : f32 to vector<2x32xf32>
    %25 = arith.addf %24, %23 : vector<2x32xf32>
    %26 = arith.divf %24, %25 : vector<2x32xf32>
    %27 = vector.extract_strided_slice %14 {offsets = [0, 64], sizes = [2, 32], strides = [1, 1]} : vector<2x128xf32> to vector<2x32xf32>
    %28 = math.tanh %27 : vector<2x32xf32>
    %29 = vector.extract_strided_slice %14 {offsets = [0, 96], sizes = [2, 32], strides = [1, 1]} : vector<2x128xf32> to vector<2x32xf32>
    %30 = arith.negf %29 : vector<2x32xf32>
    %31 = math.exp %30 : vector<2x32xf32>
    %cst_16 = arith.constant 1.000000e+00 : f32
    %32 = vector.broadcast %cst_16 : f32 to vector<2x32xf32>
    %33 = arith.addf %32, %31 : vector<2x32xf32>
    %34 = arith.divf %32, %33 : vector<2x32xf32>
    %35 = arith.mulf %26, %6 : vector<2x32xf32>
    %36 = arith.mulf %20, %28 : vector<2x32xf32>
    %37 = arith.addf %35, %36 : vector<2x32xf32>
    %38 = math.tanh %37 : vector<2x32xf32>
    %39 = arith.mulf %34, %38 : vector<2x32xf32>
    %c0_17 = arith.constant 0 : index
    %c0_18 = arith.constant 0 : index
    %40 = vector.load %arg7[%c0_17, %c0_18] : memref<2x32xf32, #tpu.memory_space<vmem>>, vector<2x32xf32>
    tpu.vector_store %arg7[%c0_17, %c0_18], %37 {strides = array<i32>} : memref<2x32xf32, #tpu.memory_space<vmem>>, vector<2x32xf32>,
    %c0_19 = arith.constant 0 : index
    %c0_20 = arith.constant 0 : index
    %41 = vector.load %arg6[%c0_19, %c0_20] : memref<2x32xf32, #tpu.memory_space<vmem>>, vector<2x32xf32>
    tpu.vector_store %arg6[%c0_19, %c0_20], %39 {strides = array<i32>} : memref<2x32xf32, #tpu.memory_space<vmem>>, vector<2x32xf32>,
    %c0_21 = arith.constant 0 : index
    %c0_22 = arith.constant 0 : index
    %c0_23 = arith.constant 0 : index
    %42 = vector.load %arg5[%c0_21, %c0_22, %c0_23] : memref<1x2x32xf32, #tpu.memory_space<vmem>>, vector<1x2x32xf32>
    %43 = vector.shape_cast %42 : vector<1x2x32xf32> to vector<2x32xf32>
    %44 = vector.shape_cast %39 : vector<2x32xf32> to vector<1x2x32xf32>
    tpu.vector_store %arg5[%c0_21, %c0_22, %c0_23], %44 {strides = array<i32>} : memref<1x2x32xf32, #tpu.memory_space<vmem>>, vector<1x2x32xf32>,
    return
  }
  func.func @transform_0(%arg0: i32) -> (i32, i32, i32) {
    %c0_i32 = arith.constant 0 : i32
    %c0_i32_0 = arith.constant 0 : i32
    %c0_i32_1 = arith.constant 0 : i32
    return %arg0, %c0_i32, %c0_i32_0 : i32, i32, i32
  }
  func.func @transform_1(%arg0: i32) -> (i32, i32) {
    %c0_i32 = arith.constant 0 : i32
    %c0_i32_0 = arith.constant 0 : i32
    %c0_i32_1 = arith.constant 0 : i32
    return %c0_i32, %c0_i32_0 : i32, i32
  }
  func.func @transform_2(%arg0: i32) -> (i32, i32) {
    %c0_i32 = arith.constant 0 : i32
    %c0_i32_0 = arith.constant 0 : i32
    %c0_i32_1 = arith.constant 0 : i32
    return %c0_i32, %c0_i32_0 : i32, i32
  }
  func.func @transform_3(%arg0: i32) -> (i32, i32) {
    %c0_i32 = arith.constant 0 : i32
    %c0_i32_0 = arith.constant 0 : i32
    %c0_i32_1 = arith.constant 0 : i32
    return %c0_i32, %c0_i32_0 : i32, i32
  }
  func.func @transform_4(%arg0: i32) -> (i32, i32, i32) {
    %c0_i32 = arith.constant 0 : i32
    %c0_i32_0 = arith.constant 0 : i32
    %c0_i32_1 = arith.constant 0 : i32
    return %arg0, %c0_i32, %c0_i32_0 : i32, i32, i32
  }
}

</mosaic_0001>

<bundles_post_ra>
// kernel: tpu_custom_call.1
= control target key start
LH: loop header
LB: loop body
LE: loop exit
PB: predicated region body
PF: predicated region fallthrough
CT: control target
= control target key end

     0   :  { %9 = vsyncpa [#allocation5], 0  ;;  %s1086_s0 = inlined_call_operand.hbm [shape: f32[8,2,64], index: 0, kind: input, shape index: {}]   ;;  %s1087_s1 = inlined_call_operand.hbm [shape: f32[64,128], index: 1, kind: input, shape index: {}]   ;;  %s1088_s2 = inlined_call_operand.hbm [shape: f32[32,128], index: 2, kind: input, shape index: {}]   ;;  %s1089_s3 = inlined_call_operand.vmem [shape: f32[1,128], index: 3, kind: input, shape index: {}]   ;;  %s1090_s4 = inlined_call_operand.hbm [shape: f32[8,2,32], index: 4, kind: output, shape index: {}]  }
   0x1   :  { %11 = vsyncpa [#allocation5 + $0x1], 0 }
   0x2   :  { %12 = vsyncpa [#allocation8], 0 }
   0x3   :  { %13 = vsyncpa [#allocation6], 0 }
   0x4   :  { %15 = vsyncpa [#allocation6 + $0x1], 0  ;;  %s898_s15 = smov 0   ;;  %s900_s16 = smov 0  }
   0x5   :  { %s902_s17 = smov 0   ;;  %s904_s18 = smov 0  }
   0x6 LB: > { %s919_s19 = sadd.s32 4294967295, %s859_s18   ;;  %s563_s20 = sadd.s32 4294967294, %s859_s18   ;;  %s859_s18 = sphi %s904_s18, %s1112_s18   ;;  %s855_s17 = sphi %s902_s17, %s1111_s17   ;;  %s851_s16 = sphi %s900_s16, %s1110_s16   ;;  %s847_s15 = sphi %s898_s15, %s1109_s15  }
   0x7   : > { %p41_p0 = scmp.ne.s32.totalorder %s851_s16, %s847_s15  ;;  %p1091_p1 = scmp.eq.s32.totalorder %s919_s19, 0 }
   0x8   : > { %p134_p3 = scmp.eq.s32.totalorder %s563_s20, 7  ;;  %p564_p5 = scmp.ge.s32.totalorder %s859_s18, 1 }
   0x9   : > { %p928_p4 = por %p1091_p1, %p41_p0  ;;  %p141_p7 = scmp.lt.s32.totalorder %s859_s18, 9 }
   0xa   : > { %p933_p6 = por %p134_p3, %p41_p0  ;;  %s861_s24 = smov [#allocation7]  }
   0xb   : > { %s1095_s21 = scalar_select %p928_p4, 1, 0 }
   0xc   : > { %s1096_s22 = scalar_select %p933_p6, 1, 0 }
   0xd   : > { %p939_p9 = pnand %p564_p5, %p141_p7  ;;  %s153_s25 = sshll.u32 %s861_s24, 4  ;;  %s154_s25 = int_to_ptr.vmem [resolvable:$true] %s153_s25 }
   0xe   : > { %s862_s27 = smov [#allocation9]   ;;  %s722_s29 = scalar_lea.vmem %s154_s25, 1024 }
   0xf   : > { %s1097_s23 = scalar_select %p939_p9, 1, 0 }
  0x10   : > { %p640_p10 = pneg %p939_p9  ;;  %s166_s28 = sshll.u32 %s862_s27, 4  ;;  %s167_s28 = int_to_ptr.vmem [resolvable:$true] %s166_s28 }
  0x11   : > { %p723_p13 = scmp.ne.s32.totalorder %s154_s25, %s722_s29  ;;  %p730_p5 = scmp.lt.s32.totalorder %s154_s25, %s154_s25 }
  0x12   : > { %p947_p11 = pnand %p640_p10, %p1091_p1  ;;  %p731_p7 = scmp.lt.s32.totalorder %s722_s29, %s722_s29 }
  0x14   : > { %p713_p12 = pneg %p947_p11  ;;  %p732_p8 = por %p731_p7, %p730_p5 }
  0x16   : > { %p725_p0 = pnand %p723_p13, %p713_p12 }
  0x18   : > { %p726_p3 = pneg %p725_p0 }
  0x1a   : > { %p733_p10 = pnand %p732_p8, %p726_p3 }
  0x1c   : > { %736 = shalt.err (!%p733_p10)
}
  0x1d   : > { %s863_s30 = smov 128   ;;  %s864_s5 = smov 8  }
  0x1e   : > { %643 = dma.hbm_to_vmem [thread:$0]  (!%p947_p11), %s1087_s1, 1024, %s154_s25, [#allocation8], %s863_s30, %s863_s30, %s864_s5  }
  0x1f   : > { %s748_s8 = scalar_lea.vmem %s167_s28, 512  ;;  %p756_p2 = scmp.lt.s32.totalorder %s167_s28, %s167_s28 }
  0x20   : > { %p749_p1 = scmp.ne.s32.totalorder %s167_s28, %s748_s8  ;;  %p757_p6 = scmp.lt.s32.totalorder %s748_s8, %s748_s8 }
  0x22   : > { %p751_p13 = pnand %p749_p1, %p713_p12  ;;  %p758_p5 = por %p757_p6, %p756_p2 }
  0x24   : > { %p752_p0 = pneg %p751_p13 }
  0x26   : > { %p759_p8 = pnand %p758_p5, %p752_p0 }
  0x28   : > { %762 = shalt.err (!%p759_p8)
}
  0x29   : > { %646 = dma.hbm_to_vmem [thread:$0]  (!%p947_p11), %s1088_s2, 512, %s167_s28, [#allocation8], %s863_s30, %s863_s30, %s864_s5  }
  0x2a   : > { %s970_s11 = sadd.s32 1, %s859_s18   ;;  %s28_s12 = sadd.s32 1, %s855_s17 }
  0x2b   : > { %s25_s13 = ssub.s32 %s859_s18, %s970_s11  ;;  %p35_p1 = scmp.ne.s32.totalorder %s855_s17, %s851_s16 }
  0x2c   : > { %p26_p2 = scmp.eq.s32.totalorder %s25_s13, 0  ;;  %p36_p6 = scmp.eq.s32.totalorder %s859_s18, 0 }
  0x2d   : > { %p1099_p12 = scmp.eq.s32.totalorder %s919_s19, 7  ;;  %p657_p7 = scmp.lt.s32.totalorder %s859_s18, 8 }
  0x2e   : > { %s986_s20 = scalar_select %p26_p2, %s855_s17, %s28_s12  }
  0x2f   : > { %p980_p3 = por %p1099_p12, %p35_p1  ;;  %p37_p10 = por %p36_p6, %p35_p1 }
  0x30   : > { %s183_s24 = sand.u32 1, %s855_s17   ;;  %s569_s26 = sshll.u32 %s859_s18, 5 }
  0x31   : > { %s1100_s14 = scalar_select %p980_p3, 1, 0 }
  0x32   : > { %s568_s25 = sshll.u32 %s183_s24, 1  ;;  %s993_s29 = scalar_lea.hbm %s1086_s0, %s569_s26 }
  0x33   : > { %s187_s30 = scalar_lea.vmem [#allocation4], %s568_s25  ;;  %p995_p11 = pnand %p657_p7, %p37_p10 }
  0x34   : > { %s194_s5 = sshll.u32 %s187_s30, 4  ;;  %s184_s7 = scalar_lea.sflag [#allocation5], %s183_s24  ;;  %s195_s5 = int_to_ptr.vmem [resolvable:$true] %s194_s5 }
  0x35   : > { %s763_s8 = scalar_lea.hbm %s993_s29, 32  ;;  %p765_p0 = pneg %p995_p11 }
  0x36   : > { %p764_p13 = scmp.ne.s32.totalorder %s993_s29, %s763_s8  ;;  %s768_s12 = scalar_lea.hbm %s1086_s0, 256 }
  0x37   : > { %p769_p1 = scmp.lt.s32.totalorder %s993_s29, %s1086_s0  ;;  %p770_p2 = scmp.lt.s32.totalorder %s768_s12, %s763_s8 }
  0x38   : > { %p766_p5 = pnand %p765_p0, %p764_p13 }
  0x39   : > { %p771_p6 = por %p770_p2, %p769_p1 }
  0x3a   : > { %p767_p8 = pneg %p766_p5 }
  0x3c   : > { %p772_p12 = pnand %p771_p6, %p767_p8 }
  0x3e   : > { %775 = shalt.err (!%p772_p12)
}
  0x3f   : > { %s776_s26 = scalar_lea.vmem %s195_s5, 32  ;;  %s865_s24 = smov [#allocation4]  }
  0x40   : > { %p777_p7 = scmp.ne.s32.totalorder %s195_s5, %s776_s26  ;;  %s781_s27 = sshll.u32 %s865_s24, 4  ;;  %s782_s27 = int_to_ptr.vmem [resolvable:$false] %s781_s27 }
  0x41   : > { %s783_s28 = scalar_lea.vmem %s782_s27, 64  ;;  %p784_p13 = scmp.lt.s32.totalorder %s195_s5, %s782_s27 }
  0x42   : > { %p779_p10 = pnand %p777_p7, %p765_p0  ;;  %p785_p5 = scmp.lt.s32.totalorder %s783_s28, %s776_s26 }
  0x44   : > { %p780_p3 = pneg %p779_p10  ;;  %p786_p4 = por %p785_p5, %p784_p13 }
  0x46   : > { %p787_p9 = pnand %p786_p4, %p780_p3 }
  0x48   : > { %790 = shalt.err (!%p787_p9)
}
  0x49   : > { %650 = dma.hbm_to_vmem [thread:$0]  (!%p995_p11), %s993_s29, 32, %s195_s5, %s184_s7  }
  0x4a   : > { %p1102_p8 = scmp.ne.s32.totalorder %s1097_s23, 0 }
  0x4b   : > { %s1016_s30 = sand.u32 (!%p1102_p8), 1, %s851_s16   ;;  %p1103_p0 = scmp.ne.s32.totalorder (!%p1102_p8), %s1095_s21, 0 }
  0x4c   : > { %203 = sbr.rel (%p1102_p8) target bundleno = 815 (0x32f), region = 36  ;;  %s571_s8 = sshll.u32 (!%p1102_p8), %s1016_s30, 1 }
  0x4d   : > { %s206_s9 = scalar_lea.sflag (!%p1102_p8), [#allocation5], %s1016_s30  ;;  %s1020_s10 = scalar_lea.vmem (!%p1102_p8), [#allocation4], %s571_s8 }
  0x51   : > { %834 = dma.done.wait (%p1103_p0), %s206_s9, 32  }
  0x52   : > { %836 = vsyncadd (%p1103_p0), %s206_s9, 4294967264  ;;  %p1104_p4 = scmp.eq.s32.totalorder %s919_s19, 0 }
  0x54   : > { %838 = dma.done.wait (%p1104_p4), [#allocation8], 1536   ;;  %p1105_p9 = pmov %p1104_p4 }
  0x55   : > { %s1030_s23 = scalar_lea.vmem [#allocation10], %s571_s8  ;;  %p1106_p3 = scmp.ne.s32.totalorder %s919_s19, 0 }
  0x56   : > { %840 = vsyncadd (%p1105_p9), [#allocation8], 4294965760 }
  0x57   : > { %245 = sbr.rel (%p1106_p3) target bundleno = 94 (0x5e), region = 52 }
  0x5c   : > { %vm246_vm0 = vcmask 254976   ;;  %v866_v0 = vmov 0.0  }
  0x5d   : > { %247 = vst.msk [vmem:[#allocation2] sm:$0x3] %vm246_vm0, %v866_v0  ;;  %248 = vst.msk [vmem:[#allocation3] sm:$0x3] %vm246_vm0, %v866_v0 }
  0x5e PF: > { %v259_v1 = vld [vmem:[#allocation7 + $0x38] sm:$0xff]  ;;  %v867_v2 = vmov 0.0   ;;  %v258_v3 = vld [vmem:[#allocation7 + $0x30] sm:$0xff]  ;;  %v257_v6 = vld [vmem:[#allocation7 + $0x28] sm:$0xff]  ;;  %vm264_vm1 = vcmask 261120   ;;  %vm868_vm2 = vmmov 0  }
  0x5f   : > { %609 = vmatprep.subr.mxu1 %v867_v2  ;;  %598 = vmatprep.subr.mxu0 %v867_v2  ;;  %v263_v4 = vld [vmem:[#allocation9 + $0x18] sm:$0xff]  ;;  %v262_v5 = vld [vmem:[#allocation9 + $0x10] sm:$0xff]  ;;  %v261_v7 = vld [vmem:[#allocation9 + $0x8] sm:$0xff]  ;;  %vm338_vm3 = vcmask 523264   ;;  %s869_s5 = smov 64   ;;  %s870_s6 = smov 32  }
  0x60   : > { %610 = vmatpush3.msra.mxu1 %v259_v1  ;;  %599 = vmatpush3.msra.mxu0 %v263_v4  ;;  %v256_v8 = vld [vmem:[#allocation7 + $0x20] sm:$0xff]  ;;  %v255_v10 = vld [vmem:[#allocation7 + $0x18] sm:$0xff]  ;;  %v254_v12 = vld [vmem:[#allocation7 + $0x10] sm:$0xff]  ;;  %s871_s7 = smov 96   ;;  %vm452_vm4 = vcmask 254976   ;;  %s581_s12 = sshll.u32 %s919_s19, 5 }
  0x61   : > { %611 = vmatprep.subr.mxu1 %v867_v2  ;;  %600 = vmatprep.subr.mxu0 %v867_v2  ;;  %v260_v9 = vld [vmem:[#allocation9] sm:$0xff]  ;;  %v253_v13 = vld [vmem:[#allocation7 + $0x8] sm:$0xff]  ;;  %v249_v15 = vld [vmem:[%s1020_s10] sm:$0x3]  ;;  %s474_s13 = sshll.u32 %s1030_s23, 4  ;;  %s1043_s24 = scalar_lea.hbm %s1090_s4, %s581_s12  ;;  %s1045_s13 = int_to_ptr.vmem [resolvable:$true] %s474_s13 }
  0x62   : > { %612 = vmatpush3.msra.mxu1 %v258_v3  ;;  %601 = vmatpush3.msra.mxu0 %v262_v5  ;;  %v252_v14 = vld [vmem:[#allocation7] sm:$0xff]  ;;  %v578_v19 = vld [vmem:[%s1089_s3] ss:$0 sm:$0xff]  ;;  %s461_s27 = scalar_lea.sflag [#allocation6], %s1016_s30  ;;  %s791_s28 = scalar_lea.vmem %s1045_s13, 32 }
  0x63   : > { %613 = vmatprep.subr.mxu1 %v867_v2  ;;  %602 = vmatprep.subr.mxu0 %v867_v2  ;;  %p792_p11 = scmp.ne.s32.totalorder %s1045_s13, %s791_s28  ;;  %p1107_p1 = scmp.ne.s32.totalorder %s1100_s14, 0 }
  0x64   : > { %614 = vmatpush3.msra.mxu1 %v257_v6  ;;  %603 = vmatpush3.msra.mxu0 %v261_v7  ;;  %v250_v11 = vld [vmem:[#allocation2] sm:$0x3]  ;;  %v251_v24 = vld [vmem:[#allocation3] sm:$0x3]  ;;  %s872_s19 = smov [#allocation10]  }
  0x65   : > { %615 = vmatprep.subr.mxu1 %v867_v2  ;;  %604 = vmatprep.subr.mxu0 %v867_v2  ;;  %p793_p2 = pnand %p792_p11, %p1107_p1  ;;  %s795_s8 = sshll.u32 %s872_s19, 4  ;;  %s796_s8 = int_to_ptr.vmem [resolvable:$false] %s795_s8 }
  0x66   : > { %616 = vmatpush3.msra.mxu1 %v256_v8  ;;  %605 = vmatpush3.msra.mxu0 %v260_v9  ;;  %s797_s9 = scalar_lea.vmem %s796_s8, 64  ;;  %p798_p12 = scmp.lt.s32.totalorder %s1045_s13, %s796_s8 }
  0x67   : > { %617 = vmatprep.subr.mxu1 %v867_v2  ;;  %606 = vmatprep.mubr.msk.f32.mxu0 %vm868_vm2, %v867_v2  ;;  %p794_p6 = pneg %p793_p2  ;;  %p799_p7 = scmp.lt.s32.totalorder %s797_s9, %s791_s28 }
  0x68   : > { %618 = vmatpush3.msra.mxu1 %v255_v10  ;;  %607 = vmatmul.mubr.msk.f32.vlgmr.msra.gmra.mxu0 %vm264_vm1, %v250_v11 }
  0x69   : > { %619 = vmatprep.subr.mxu1 %v867_v2  ;;  %625 = vmatprep.mubr.msk.f32.mxu1 %vm868_vm2, %v867_v2  ;;  %p800_p10 = por %p799_p7, %p798_p12 }
  0x6a   : > { %620 = vmatpush3.msra.mxu1 %v254_v12 }
  0x6b   : > { %621 = vmatprep.subr.mxu1 %v867_v2  ;;  %p801_p13 = pnand %p800_p10, %p794_p6 }
  0x6c   : > { %622 = vmatpush3.msra.mxu1 %v253_v13 }
  0x6d   : > { %623 = vmatprep.subr.mxu1 %v867_v2 }
  0x6e   : > { %624 = vmatpush3.msra.mxu1 %v252_v14 }
  0x6f   : > { %626 = vmatmul.mubr.msk.f32.vlgmr.msra.gmra.mxu1 %vm338_vm3, %v249_v15 }
 0x128   : > { %v334_v16 = vpop.f32.mrf.mxu0 }
 0x12a   : > { %v608_v17 = vpop.f32.mrf.mxu0 }
 0x12f   : > { %v408_v18 = vpop.f32.mrf.mxu1 }
 0x130   : > { %v409_v20 = vadd.f32 %v408_v18, %v334_v16 }
 0x131   : > { %v627_v21 = vpop.f32.mrf.mxu1 }
 0x132   : > { %v419_v22 = vadd.f32 %v578_v19, %v409_v20 }
 0x134   : > { %703 = vtanh.f32 %v419_v22  ;;  %v579_v25 = vmul.f32 -1.442695, %v419_v22 }
 0x136   : > { %705 = vpow2.f32 %v579_v25 }
 0x141   : > { %v704_v23 = vpop.eup %703 }
 0x142   : > { %433 = vrot.lane.b32.xlu0 %v704_v23, %s869_s5 }
 0x143   : > { %v706_v26 = vpop.eup %705 }
 0x144   : > { %v423_v27 = vadd.f32 1.0, %v706_v26 }
 0x146   : > { %428 = vrot.lane.b32.xlu0 %v251_v24, %s870_s6  ;;  %707 = vrcp.f32 %v423_v27 }
 0x153   : > { %v708_v28 = vpop.eup %707 }
 0x1b4   : > { %v434_v29 = vpop.permute.xlu0 %433 }
 0x1b5   : > { %v436_v30 = vmul.f32 %v708_v28, %v434_v29 }
 0x1b7   : > { %438 = vrot.lane.b32.xlu1 %v436_v30, %s870_s6 }
 0x1b8   : > { %v429_v31 = vpop.permute.xlu0 %428 }
 0x1b9   : > { %v431_v32 = vmul.f32 %v708_v28, %v429_v31 }
 0x229   : > { %v439_v33 = vpop.permute.xlu1 %438 }
 0x22a   : > { %v441_v34 = vadd.f32 %v439_v33, %v431_v32 }
 0x22c   : > { %709 = vtanh.f32 %v441_v34 }
 0x239   : > { %v710_v35 = vpop.eup %709 }
 0x23a   : > { %444 = vrot.lane.b32.xlu1 %v710_v35, %s869_s5 }
 0x23e   : > { %449 = vrot.lane.b32.xlu1 %v441_v34, %s871_s7 }
 0x2ac   : > { %v445_v36 = vpop.permute.xlu1 %444 }
 0x2ad   : > { %v447_v37 = vmul.f32 %v708_v28, %v445_v36 }
 0x2af   : > { %455 = vrot.lane.b32.xlu0 %v447_v37, %s870_s6 }
 0x2b0   : > { %v450_v38 = vpop.permute.xlu1 %449 }
 0x2b1   : > { %453 = vst.msk [vmem:[#allocation3] sm:$0x3] %vm452_vm4, %v450_v38 }
 0x321   : > { %v456_v39 = vpop.permute.xlu0 %455 }
 0x322   : > { %458 = vst.msk [vmem:[#allocation2] sm:$0x3] %vm452_vm4, %v456_v39  ;;  %459 = vst.msk [vmem:[%s1030_s23] sm:$0x3] %vm452_vm4, %v456_v39 }
 0x323   : > { %804 = shalt.err (!%p801_p13)
}
 0x324   : > { %s805_s10 = scalar_lea.hbm %s1043_s24, 32  ;;  %s809_s21 = scalar_lea.hbm %s1090_s4, 256 }
 0x325   : > { %p806_p5 = scmp.ne.s32.totalorder %s1043_s24, %s805_s10  ;;  %p810_p4 = scmp.lt.s32.totalorder %s1043_s24, %s1090_s4 }
 0x326   : > { %p811_p9 = scmp.lt.s32.totalorder %s809_s21, %s805_s10 }
 0x327   : > { %p807_p8 = pnand %p806_p5, %p1107_p1 }
 0x328   : > { %p812_p3 = por %p811_p9, %p810_p4 }
 0x329   : > { %p808_p0 = pneg %p807_p8 }
 0x32b   : > { %p813_p11 = pnand %p812_p3, %p808_p0 }
 0x32d   : > { %816 = shalt.err (!%p813_p11)
}
 0x32e   : > { %638 = dma.vmem_to_hbm [thread:$0]  (%p1107_p1), %s1045_s13, 32, %s1043_s24, %s461_s27  }
 0x32f PF: > { %p660_p2 = scmp.ge.s32.totalorder %s859_s18, 2  ;;  %s486_s6 = sand.u32 1, %s847_s15  }
 0x330   : > { %p1108_p6 = scmp.ne.s32.totalorder %s1096_s22, 0  ;;  %s487_s7 = scalar_lea.sflag [#allocation6], %s486_s6 }
 0x332   : > { %p652_p12 = pnand %p660_p2, %p1108_p6 }
 0x334   : > { %p653_p7 = pneg %p652_p12 }
 0x336   : > { %842 = dma.done.wait (%p653_p7), %s487_s7, 32  }
 0x337   : > { %844 = vsyncadd (%p653_p7), %s487_s7, 4294967264  ;;  %p18_p10 = scmp.ge.s32.totalorder %s970_s11, 10   ;;  %s1109_s15 = smov %s851_s16 }
 0x338   : > { %s1110_s16 = smov %s855_s17  ;;  %s1111_s17 = smov %s986_s20 }
 0x339   : > { %s1112_s18 = smov %s970_s11  ;;  %20 = sbr.rel (!%p18_p10) target bundleno = 6 (0x6), region = 93 }
 0x33e   :  { %492 = vsyncpa [#allocation5], 1 }
 0x33f   :  { %494 = vsyncpa [#allocation5 + $0x1], 1 }
 0x340   :  { %495 = vsyncpa [#allocation8], 1 }
 0x341   :  { %496 = vsyncpa [#allocation6], 1 }
 0x342   :  { %498 = vsyncpa [#allocation6 + $0x1], 1 }

</bundles_post_ra>
